<compile_context>
chip_gen: v7x
topology: tpu7x:2x2x1
jax: 0.10.0
libtpu: 0.0.40
codegen_flags: <defaults>
</compile_context>

<pallas_src>
import functools

import jax
import jax.numpy as jnp
from jax.experimental import pallas as pl
from jax.experimental.pallas import tpu as pltpu

_LANE = 128
_DEFAULT_MAX_LANES = 4096          # widest lane dim tried (power-of-two multiple of 128)
_MIN_PALLAS_ELEMS = 1 << 20        # below this, plain jnp (fusion + no launch overhead) wins


@functools.lru_cache(maxsize=1)
def _tpu_config():
    """(vmem_bytes, num_tensorcores, tile_bytes_per_input, vmem_limit_bytes)."""
    vmem_bytes = 128 << 20
    num_cores = 1
    try:
        info = pltpu.get_tpu_info()
        vmem_bytes = int(getattr(info, "vmem_capacity_bytes", vmem_bytes) or vmem_bytes)
        for name in ("num_cores", "num_tensorcores", "tensorcore_count", "cores_per_chip"):
            val = getattr(info, name, None)
            if val:
                num_cores = int(val)
                break
    except Exception:
        pass
    if num_cores <= 1:
        try:
            if "v7" in jax.devices()[0].device_kind.lower():
                num_cores = 2          # v7x: 2 TensorCores per chip
        except Exception:
            pass
    if vmem_bytes <= (64 << 20):       # v7x-class: 64 MiB VMEM per TC -> smaller tiles
        tile_bytes, vmem_limit = 4 << 20, 40 << 20
    else:                              # v5e / v6e: 128 MiB VMEM
        tile_bytes, vmem_limit = 8 << 20, 56 << 20
    return vmem_bytes, max(1, num_cores), tile_bytes, vmem_limit


def _loss_f32(p_ref, t_ref, beta):
    """Smooth-L1 loss of one tile, computed in f32 (inputs may be bf16/f32)."""
    diff = jnp.abs(p_ref[...].astype(jnp.float32) - t_ref[...].astype(jnp.float32))
    if beta > 0.0:
        # hoisted trace-time constants: no per-element f32 divide
        return jnp.where(diff < beta, diff * diff * (0.5 / beta), diff - 0.5 * beta)
    return diff  # beta == 0 -> pure L1 (matches PyTorch; avoids 0.5/0)


def _fold_rows(tile, acc_rows):
    """Fold sublane groups with elementwise VPU adds: (row_block, W) -> (acc_rows, W)."""
    r, w = tile.shape
    if r == acc_rows:
        return tile
    return tile.reshape(r // acc_rows, acc_rows, w).sum(axis=0)


def _sum_kernel(p_ref, t_ref, out_ref, acc_ref, *, beta, rows, row_block, acc_rows,
                tiles_per_shard, total_tiles, needs_mask, sharded):
    if sharded:
        i = pl.program_id(1)
        tile_idx = pl.program_id(0) * tiles_per_shard + i
        last = pl.num_programs(1) - 1
    else:
        i = pl.program_id(0)
        tile_idx = i
        last = pl.num_programs(0) - 1

    @pl.when(i == 0)
    def _():
        acc_ref[...] = jnp.zeros_like(acc_ref)

    loss = _loss_f32(p_ref, t_ref, beta)

    def accumulate(tile):
        acc_ref[...] += _fold_rows(tile, acc_rows)

    if needs_mask:
        # Only the tail step(s) pay for masking; bulk steps accumulate unmasked.
        is_tail = tile_idx >= (total_tiles - 1)

        @pl.when(jnp.logical_not(is_tail))
        def _():
            accumulate(loss)

        @pl.when(is_tail)
        def _():
            # Rows past the real slab (ragged last tile) and entire clamped
            # duplicate tiles (unclamped tile_idx past the end) contribute zero.
            valid = rows - tile_idx * row_block
            row_ids = jax.lax.broadcasted_iota(jnp.int32, (row_block, 1), 0)
            accumulate(jnp.where(row_ids < valid, loss, 0.0))
    else:
        accumulate(loss)

    @pl.when(i == last)
    def _():
        # Single XLU cross-lane reduce, once per shard, at the end.
        out_ref[...] = jnp.sum(acc_ref[...], keepdims=True)


def _elementwise_kernel(p_ref, t_ref, o_ref, *, beta):
    o_ref[...] = _loss_f32(p_ref, t_ref, beta).astype(o_ref.dtype)


def _choose_layout(n, itemsize, max_lanes, tile_bytes):
    """Pick (lane_width, rows, row_block) for a flat, 128-divisible element count."""
    width = _LANE
    while width * 2 <= max(max_lanes, _LANE) and n % (width * 2) == 0:
        width *= 2
    rows = n // width
    sub = max(8, 32 // max(1, itemsize))            # (8,128) f32 / (16,128) bf16 tiling
    target_rows = max(sub, (tile_bytes // (itemsize * width)) // sub * sub)
    row_block = rows if rows <= target_rows else target_rows
    return width, rows, row_block


def _jnp_loss(pred, target, beta, reduction):
    diff = jnp.abs(pred.astype(jnp.float32) - target.astype(jnp.float32))
    if beta > 0.0:
        loss = jnp.where(diff < beta, diff * diff * (0.5 / beta), diff - 0.5 * beta)
    else:
        loss = diff
    if reduction == "mean":
        return loss.mean().astype(pred.dtype)
    if reduction == "sum":
        return loss.sum().astype(pred.dtype)
    return loss.astype(pred.dtype)


def custom_smooth_l1_loss(pred, target, beta=1.0, reduction="mean", *,
                          _max_lanes=_DEFAULT_MAX_LANES, _tile_bytes=None,
                          _min_pallas_elems=None, _num_shards=None):
    """Matches CustomSmoothL1Loss.forward semantics."""
    assert pred.shape == target.shape
    beta = float(beta)
    dtype = pred.dtype
    itemsize = jnp.dtype(dtype).itemsize
    n = int(pred.size)

    _, num_cores, auto_tile_bytes, vmem_limit = _tpu_config()
    tile_bytes = int(_tile_bytes) if _tile_bytes else auto_tile_bytes
    min_elems = _MIN_PALLAS_ELEMS if _min_pallas_elems is None else int(_min_pallas_elems)

    tail = n % _LANE
    n_main = n - tail
    if n < min_elems or n_main == 0:
        # Launch + per-step overhead dominates below roofline-relevant sizes.
        return _jnp_loss(pred, target, beta, reduction)

    flat_p = pred.reshape(-1)
    flat_t = target.reshape(-1)

    # <128-element ragged tail handled in plain JAX (no full-tensor pad copy).
    tail_loss = None
    if tail:
        # TODO(synk): the prefix slice below may still materialize a copy unless
        # XLA fuses it; acceptable for this rare (numel % 128 != 0) path.
        td = jnp.abs(flat_p[n_main:].astype(jnp.float32)
                     - flat_t[n_main:].astype(jnp.float32))
        tail_loss = jnp.where(td < beta, td * td * (0.5 / beta), td - 0.5 * beta) \
            if beta > 0.0 else td

    width, rows, row_block = _choose_layout(n_main, itemsize, _max_lanes, tile_bytes)
    p_src = flat_p if tail == 0 else flat_p[:n_main]
    t_src = flat_t if tail == 0 else flat_t[:n_main]
    p2d = p_src.reshape(rows, width)
    t2d = t_src.reshape(rows, width)

    total_tiles = pl.cdiv(rows, row_block)
    core_parallel = getattr(pltpu, "CORE_PARALLEL", "parallel")
    arbitrary = getattr(pltpu, "ARBITRARY", "arbitrary")

    def shard_setup(default_shards):
        ns = default_shards if _num_shards is None else int(_num_shards)
        ns = max(1, min(ns, total_tiles))
        if ns <= 1:
            return 1, total_tiles, False, ("arbitrary",), (lambda i: (i, 0))
        tps = pl.cdiv(total_tiles, ns)
        padded = ns * tps != total_tiles

        def idx(s, i):
            t = s * tps + i
            if padded:
                # trailing shard steps re-read the last valid tile; zeroed by the
                # in-kernel row mask (sum path) / rewrite identical data (none path).
                t = jnp.minimum(t, total_tiles - 1)
            return (t, 0)

        use_core = num_cores >= 2 and ns == num_cores and not isinstance(core_parallel, str)
        dims = (core_parallel, arbitrary) if use_core else ("arbitrary", "arbitrary")
        return ns, tps, padded, dims, idx

    if reduction in ("mean", "sum"):
        num_shards, tiles_per_shard, padded, dims, in_block = \
            shard_setup(min(num_cores, total_tiles))
        sharded = num_shards > 1
        ragged = total_tiles * row_block != rows
        needs_mask = ragged or padded
        acc_rows = 8 if row_block % 8 == 0 else row_block
        grid = (num_shards, tiles_per_shard) if sharded else (total_tiles,)
        out_block = (lambda s, i: (s, 0)) if sharded else (lambda i: (0, 0))
        in_spec = pl.BlockSpec((row_block, width), in_block)

        partials = pl.pallas_call(
            functools.partial(_sum_kernel, beta=beta, rows=rows, row_block=row_block,
                              acc_rows=acc_rows, tiles_per_shard=tiles_per_shard,
                              total_tiles=total_tiles, needs_mask=needs_mask,
                              sharded=sharded),
            out_shape=jax.ShapeDtypeStruct((num_shards, 1), jnp.float32),
            grid_spec=pltpu.PrefetchScalarGridSpec(
                num_scalar_prefetch=0,
                grid=grid,
                in_specs=[in_spec, in_spec],
                out_specs=pl.BlockSpec((1, 1), out_block),
                scratch_shapes=[pltpu.VMEM((acc_rows, width), jnp.float32)],
            ),
            compiler_params=pltpu.CompilerParams(
                dimension_semantics=dims, vmem_limit_bytes=vmem_limit),
        )(p2d, t2d)

        total = jnp.sum(partials)
        if tail:
            total = total + jnp.sum(tail_loss)
        if reduction == "mean":
            total = total / jnp.float32(n)
        return total.astype(dtype)

    # reduction == 'none': elementwise loss, same shape/dtype as inputs.
    num_shards, tiles_per_shard, padded, dims, io_block = \
        shard_setup(num_cores if total_tiles >= num_cores else 1)
    sharded = num_shards > 1
    grid = (num_shards, tiles_per_shard) if sharded else (total_tiles,)
    if not sharded:
        dims = ("parallel",)
    spec = pl.BlockSpec((row_block, width), io_block)

    out2d = pl.pallas_call(
        functools.partial(_elementwise_kernel, beta=beta),
        out_shape=jax.ShapeDtypeStruct((rows, width), dtype),
        grid_spec=pltpu.PrefetchScalarGridSpec(
            num_scalar_prefetch=0,
            grid=grid,
            in_specs=[spec, spec],
            out_specs=spec,
        ),
        compiler_params=pltpu.CompilerParams(
            dimension_semantics=dims, vmem_limit_bytes=vmem_limit),
    )(p2d, t2d)

    out_flat = out2d.reshape(-1)
    if tail:
        out_flat = jnp.concatenate([out_flat, tail_loss.astype(dtype)])
    return out_flat.reshape(pred.shape)


def _reference(pred, target, beta=1.0, reduction="mean"):
    diff = jnp.abs(pred.astype(jnp.float32) - target.astype(jnp.float32))
    if beta > 0:
        loss = jnp.where(diff < beta, 0.5 * diff * diff / beta, diff - 0.5 * beta)
    else:
        loss = diff
    if reduction == "mean":
        return loss.mean()
    if reduction == "sum":
        return loss.sum()
    return loss


if __name__ == "__main__":
    key = jax.random.PRNGKey(0)
    k1, k2 = jax.random.split(key)

    def check(shape, beta, reduction, **kw):
        p = jax.random.normal(k1, shape, dtype=jnp.float32)
        t = jax.random.normal(k2, shape, dtype=jnp.float32)
        out = jax.block_until_ready(
            custom_smooth_l1_loss(p, t, beta=beta, reduction=reduction, **kw))
        ref = _reference(p, t, beta=beta, reduction=reduction)
        assert jnp.allclose(out, ref, rtol=1e-5, atol=1e-6), \
            (shape, beta, reduction, out, ref)

    # Headline shape implied by the module (NCHW-like). Default settings route
    # this through the small-input jnp fallback ...
    shape = (2, 4, 16, 16)
    for red in ("mean", "sum", "none"):
        check(shape, 1.0, red)
    # ... and here we force the Pallas kernels on the same shape.
    for red in ("mean", "sum", "none"):
        check(shape, 1.0, red, _min_pallas_elems=0)
    check(shape, 0.5, "mean", _min_pallas_elems=0)
    check(shape, 0.0, "mean", _min_pallas_elems=0)   # beta == 0 -> pure L1

    # Multi-tile + ragged last tile (tiny forced tiles exercise the same code
    # paths large tensors hit).
    tiny = dict(_min_pallas_elems=0, _max_lanes=128, _tile_bytes=8 * 128 * 4)
    check((2, 4, 20, 16), 1.0, "mean", **tiny)
    check((2, 4, 20, 16), 1.0, "none", **tiny)
    # Forced 2-shard split (clamped duplicate tile + gated masking; becomes a
    # real CORE_PARALLEL split on 2-TensorCore chips).
    check((2, 4, 20, 16), 1.0, "sum", _num_shards=2, **tiny)
    check((2, 4, 20, 16), 1.0, "none", _num_shards=2, **tiny)

    # numel % 128 != 0 -> Pallas on the 128-aligned prefix + jnp tail.
    check((3, 5, 67), 1.0, "mean", _min_pallas_elems=0)
    check((3, 5, 67), 1.0, "none", _min_pallas_elems=0)

    # Moderate tensor (1M elements) on the default, auto-tiled path.
    check((8, 16, 128, 64), 1.0, "mean")
    check((8, 16, 128, 64), 1.0, "none")

    print("KERNEL_OK")
</pallas_src>

<mosaic_0001>
module attributes {stable_mosaic.version = 11 : i64} {
  func.func @_sum_kernel(%arg0: i32, %arg1: memref<1x2048xf32, #tpu.memory_space<vmem>>, %arg2: memref<1x2048xf32, #tpu.memory_space<vmem>>, %arg3: memref<1x1xf32, #tpu.memory_space<vmem>>, %arg4: memref<1x2048xf32, #tpu.memory_space<vmem>>) attributes {dimension_semantics = [#tpu.dimension_semantics<arbitrary>], iteration_bounds = array<i64: 1>, scalar_prefetch = 0 : i64, scratch_operands = 1 : i64, tpu.core_type = #tpu.core_type<tc>, window_params = [{transform_indices = @transform_0, window_bounds = array<i64: 1, 2048>}, {transform_indices = @transform_1, window_bounds = array<i64: 1, 2048>}, {pipeline_mode = #tpu.pipeline_mode<synchronous>, transform_indices = @transform_2, window_bounds = array<i64: 1, 1>}]} {
    %c0_i32 = arith.constant 0 : i32
    %0 = arith.cmpi eq, %arg0, %c0_i32 : i32
    %1 = arith.extui %0 : i1 to i32
    %c0_i32_0 = arith.constant 0 : i32
    %2 = arith.cmpi ne, %1, %c0_i32_0 : i32
    scf.if %2 {
      %cst_12 = arith.constant 0.000000e+00 : f32
      %21 = vector.broadcast %cst_12 : f32 to vector<1x2048xf32>
      %c0_13 = arith.constant 0 : index
      %c0_14 = arith.constant 0 : index
      %22 = vector.load %arg4[%c0_13, %c0_14] : memref<1x2048xf32, #tpu.memory_space<vmem>>, vector<1x2048xf32>
      tpu.vector_store %arg4[%c0_13, %c0_14], %21 {strides = array<i32>} : memref<1x2048xf32, #tpu.memory_space<vmem>>, vector<1x2048xf32>,
    } else {
    }
    %c0 = arith.constant 0 : index
    %c0_1 = arith.constant 0 : index
    %3 = vector.load %arg1[%c0, %c0_1] : memref<1x2048xf32, #tpu.memory_space<vmem>>, vector<1x2048xf32>
    %c0_2 = arith.constant 0 : index
    %c0_3 = arith.constant 0 : index
    %4 = vector.load %arg2[%c0_2, %c0_3] : memref<1x2048xf32, #tpu.memory_space<vmem>>, vector<1x2048xf32>
    %5 = arith.subf %3, %4 : vector<1x2048xf32>
    %6 = math.absf %5 : vector<1x2048xf32>
    %cst = arith.constant 1.000000e+00 : f32
    %7 = vector.broadcast %cst : f32 to vector<1x2048xf32>
    %8 = arith.cmpf olt, %6, %7 : vector<1x2048xf32>
    %9 = arith.mulf %6, %6 : vector<1x2048xf32>
    %cst_4 = arith.constant 5.000000e-01 : f32
    %10 = vector.broadcast %cst_4 : f32 to vector<1x2048xf32>
    %11 = arith.mulf %9, %10 : vector<1x2048xf32>
    %cst_5 = arith.constant 5.000000e-01 : f32
    %12 = vector.broadcast %cst_5 : f32 to vector<1x2048xf32>
    %13 = arith.subf %6, %12 : vector<1x2048xf32>
    %14 = arith.select %8, %11, %13 : vector<1x2048xi1>, vector<1x2048xf32>
    %c0_6 = arith.constant 0 : index
    %c0_7 = arith.constant 0 : index
    %15 = vector.load %arg4[%c0_6, %c0_7] : memref<1x2048xf32, #tpu.memory_space<vmem>>, vector<1x2048xf32>
    %16 = arith.addf %15, %14 : vector<1x2048xf32>
    %c0_8 = arith.constant 0 : index
    %c0_9 = arith.constant 0 : index
    %17 = vector.load %arg4[%c0_8, %c0_9] : memref<1x2048xf32, #tpu.memory_space<vmem>>, vector<1x2048xf32>
    tpu.vector_store %arg4[%c0_8, %c0_9], %16 {strides = array<i32>} : memref<1x2048xf32, #tpu.memory_space<vmem>>, vector<1x2048xf32>,
    %c0_i32_10 = arith.constant 0 : i32
    %18 = arith.cmpi eq, %arg0, %c0_i32_10 : i32
    %19 = arith.extui %18 : i1 to i32
    %c0_i32_11 = arith.constant 0 : i32
    %20 = arith.cmpi ne, %19, %c0_i32_11 : i32
    scf.if %20 {
      %c0_12 = arith.constant 0 : index
      %c0_13 = arith.constant 0 : index
      %21 = vector.load %arg4[%c0_12, %c0_13] : memref<1x2048xf32, #tpu.memory_space<vmem>>, vector<1x2048xf32>
      %22 = vector.shape_cast %21 : vector<1x2048xf32> to vector<1x1x2048xf32>
      %cst_14 = arith.constant dense<0.000000e+00> : vector<1xf32>
      %23 = vector.multi_reduction <add>, %22, %cst_14 [1, 2] : vector<1x1x2048xf32> to vector<1xf32>
      %24 = vector.shape_cast %23 : vector<1xf32> to vector<1x1x1xf32>
      %25 = vector.extract %24[0, 0, 0] : f32 from vector<1x1x1xf32>
      %26 = vector.broadcast %25 : f32 to vector<1x1xf32>
      %c0_15 = arith.constant 0 : index
      %c0_16 = arith.constant 0 : index
      %27 = vector.load %arg3[%c0_15, %c0_16] : memref<1x1xf32, #tpu.memory_space<vmem>>, vector<1x1xf32>
      tpu.vector_store %arg3[%c0_15, %c0_16], %26 {strides = array<i32>} : memref<1x1xf32, #tpu.memory_space<vmem>>, vector<1x1xf32>,
    } else {
    }
    return
  }
  func.func @transform_0(%arg0: i32) -> (i32, i32) {
    %c0_i32 = arith.constant 0 : i32
    %c0_i32_0 = arith.constant 0 : i32
    return %arg0, %c0_i32 : i32, i32
  }
  func.func @transform_1(%arg0: i32) -> (i32, i32) {
    %c0_i32 = arith.constant 0 : i32
    %c0_i32_0 = arith.constant 0 : i32
    return %arg0, %c0_i32 : i32, i32
  }
  func.func @transform_2(%arg0: i32) -> (i32, i32) {
    %c0_i32 = arith.constant 0 : i32
    %c0_i32_0 = arith.constant 0 : i32
    %c0_i32_1 = arith.constant 0 : i32
    return %c0_i32, %c0_i32_0 : i32, i32
  }
}

</mosaic_0001>

<bundles_post_ra>
// kernel: tpu_custom_call.1
= control target key start
LH: loop header
LB: loop body
LE: loop exit
PB: predicated region body
PF: predicated region fallthrough
CT: control target
= control target key end

     0   :  { %7 = vsyncpa [#allocation4], 0  ;;  %s372_s0 = inlined_call_operand.hbm [shape: f32[1,2048], index: 0, kind: input, shape index: {}]   ;;  %s373_s1 = inlined_call_operand.hbm [shape: f32[1,2048], index: 1, kind: input, shape index: {}]   ;;  %s374_s2 = inlined_call_operand.hbm [shape: f32[1,1], index: 2, kind: output, shape index: {}]  }
   0x1   :  { %8 = vsyncpa [#allocation7], 0 }
   0x2   :  { %9 = vsyncpa [#allocation5], 0  ;;  %s292_s9 = smov [#allocation3]   ;;  %s293_s11 = smov [#allocation6]  }
   0x3   :  { %s16_s10 = sshll.u32 %s292_s9, 4  ;;  %s26_s12 = sshll.u32 %s293_s11, 4  ;;  %s17_s10 = int_to_ptr.vmem [resolvable:$true] %s16_s10  ;;  %s27_s12 = int_to_ptr.vmem [resolvable:$true] %s26_s12 }
   0x4   :  { %s220_s15 = scalar_lea.hbm %s372_s0, 256 }
   0x5   :  { %p221_p0 = scmp.ne.s32.totalorder %s372_s0, %s220_s15  ;;  %p224_p1 = scmp.lt.u32.totalorder %s220_s15, %s372_s0 }
   0x7   :  { %p226_p2 = pnand %p224_p1, %p221_p0 }
   0x9   :  { %229 = shalt.err (!%p226_p2)
}
   0xa   :  { %s230_s20 = scalar_lea.vmem %s17_s10, 256  ;;  %p235_p4 = scmp.lt.s32.totalorder %s17_s10, %s17_s10 }
   0xb   :  { %p231_p3 = scmp.ne.s32.totalorder %s17_s10, %s230_s20  ;;  %p236_p5 = scmp.lt.s32.totalorder %s230_s20, %s230_s20 }
   0xd   :  { %p237_p6 = por %p236_p5, %p235_p4 }
   0xf   :  { %p238_p7 = pnand %p237_p6, %p231_p3 }
  0x11   :  { %241 = shalt.err (!%p238_p7)
}
  0x12   :  { %19 = dma.hbm_to_vmem [thread:$0]  %s372_s0, 256, %s17_s10, [#allocation4]  }
  0x13   :  { %s242_s25 = scalar_lea.hbm %s373_s1, 256 }
  0x14   :  { %p243_p8 = scmp.ne.s32.totalorder %s373_s1, %s242_s25  ;;  %p246_p9 = scmp.lt.u32.totalorder %s242_s25, %s373_s1 }
  0x16   :  { %p248_p10 = pnand %p246_p9, %p243_p8 }
  0x18   :  { %251 = shalt.err (!%p248_p10)
}
  0x19   :  { %s252_s30 = scalar_lea.vmem %s27_s12, 256  ;;  %p257_p12 = scmp.lt.s32.totalorder %s27_s12, %s27_s12 }
  0x1a   :  { %p253_p11 = scmp.ne.s32.totalorder %s27_s12, %s252_s30  ;;  %p258_p13 = scmp.lt.s32.totalorder %s252_s30, %s252_s30 }
  0x1c   :  { %p259_p0 = por %p258_p13, %p257_p12 }
  0x1e   :  { %p260_p1 = pnand %p259_p0, %p253_p11 }
  0x20   :  { %263 = shalt.err (!%p260_p1)
}
  0x21   :  { %29 = dma.hbm_to_vmem [thread:$0]  %s373_s1, 256, %s27_s12, [#allocation7]  }
  0x22   :  { %286 = dma.done.wait [#allocation4], 256  }
  0x23   :  { %287 = vsyncadd [#allocation4], 4294967040 }
  0x24   :  { %288 = dma.done.wait [#allocation7], 256  }
  0x25   :  { %289 = vsyncadd [#allocation7], 4294967040  ;;  %v73_v0 = vlaneseq  ;;  %v42_v1 = vld [vmem:[#allocation3] sm:$0xff]  ;;  %v43_v2 = vld [vmem:[#allocation3 + $0x8] sm:$0xff]  ;;  %vm153_vm1 = vcmask 1040384   ;;  %s294_s1 = smov [#allocation8]  }
  0x26   :  { %v44_v3 = vld [vmem:[#allocation6] sm:$0xff]  ;;  %v45_v4 = vld [vmem:[#allocation6 + $0x8] sm:$0xff]  ;;  %s203_s4 = sshll.u32 %s294_s1, 4  ;;  %vm195_vm3 = vcmask 0   ;;  %s204_s4 = int_to_ptr.vmem [resolvable:$true] %s203_s4 }
  0x27   :  { %v46_v5 = vsub.f32 %v42_v1, %v44_v3  ;;  %v334_v6 = vshrl.u32 %v73_v0, 7  ;;  %v47_v7 = vsub.f32 %v43_v2, %v45_v4  ;;  %s264_s6 = scalar_lea.vmem %s204_s4, 16  ;;  %s268_s7 = scalar_lea.vmem %s204_s4, 32 }
  0x28   :  { %p265_p2 = scmp.ne.s32.totalorder %s204_s4, %s264_s6  ;;  %p269_p3 = scmp.lt.s32.totalorder %s204_s4, %s204_s4 }
  0x29   :  { %v48_v8 = vand.u32 2147483647, %v46_v5  ;;  %v75_v11 = vsub.s32 0, %v334_v6  ;;  %v79_v12 = vsub.s32 1, %v334_v6  ;;  %v83_v13 = vsub.s32 2, %v334_v6  ;;  %p270_p4 = scmp.lt.s32.totalorder %s268_s7, %s264_s6 }
  0x2a   :  { %v49_v14 = vand.u32 2147483647, %v47_v7  ;;  %v87_v16 = vsub.s32 3, %v334_v6  ;;  %v91_v21 = vsub.s32 4, %v334_v6  ;;  %v95_v24 = vsub.s32 5, %v334_v6 }
  0x2b   :  { %v52_v9 = vmul.f32 %v48_v8, %v48_v8  ;;  %v213_v10 = vadd.f32 -0.5, %v48_v8  ;;  %vm50_vm0 = vcmp.lt.f32.partialorder %v48_v8, 1.0  ;;  %v99_v25 = vsub.s32 6, %v334_v6  ;;  %p271_p5 = por %p270_p4, %p269_p3 }
  0x2c   :  { %v53_v22 = vmul.f32 %v49_v14, %v49_v14  ;;  %v214_v31 = vadd.f32 -0.5, %v49_v14  ;;  %vm51_vm2 = vcmp.lt.f32.partialorder %v49_v14, 1.0  ;;  %v103_v34 = vsub.s32 7, %v334_v6 }
  0x2d   :  { %v54_v15 = vmul.f32 0.5, %v52_v9  ;;  %p272_p6 = pnand %p271_p5, %p265_p2 }
  0x2e   :  { %v55_v30 = vmul.f32 0.5, %v53_v22 }
  0x2f   :  { %v58_v17 = vsel %vm50_vm0, %v54_v15, %v213_v10 }
  0x30   :  { %v76_v18 = vrot.slane %v58_v17, %v75_v11  ;;  %v80_v19 = vrot.slane %v58_v17, %v79_v12  ;;  %v84_v20 = vrot.slane %v58_v17, %v83_v13  ;;  %v88_v23 = vrot.slane %v58_v17, %v87_v16 }
  0x31   :  { %v92_v26 = vrot.slane %v58_v17, %v91_v21  ;;  %v96_v33 = vrot.slane %v58_v17, %v95_v24  ;;  %v100_v37 = vrot.slane %v58_v17, %v99_v25  ;;  %v59_v39 = vsel %vm51_vm2, %v55_v30, %v214_v31 }
  0x32   :  { %v154_v27 = vsel %vm153_vm1, %v76_v18, 0.0  ;;  %v155_v28 = vsel %vm153_vm1, %v80_v19, 0.0  ;;  %v157_v29 = vsel %vm153_vm1, %v84_v20, 0.0  ;;  %v159_v35 = vsel %vm153_vm1, %v88_v23, 0.0 }
  0x33   :  { %v156_v32 = vadd.f32 %v155_v28, %v154_v27  ;;  %v161_v38 = vsel %vm153_vm1, %v92_v26, 0.0  ;;  %v104_v41 = vrot.slane %v58_v17, %v103_v34  ;;  %v163_v42 = vsel %vm153_vm1, %v96_v33, 0.0 }
  0x34   :  { %v108_v44 = vrot.slane %v59_v39, %v75_v11  ;;  %v165_v45 = vsel %vm153_vm1, %v100_v37, 0.0  ;;  %v112_v47 = vrot.slane %v59_v39, %v79_v12  ;;  %v116_v50 = vrot.slane %v59_v39, %v83_v13 }
  0x35   :  { %v158_v36 = vadd.f32 %v157_v29, %v156_v32  ;;  %v167_v48 = vsel %vm153_vm1, %v104_v41, 0.0  ;;  %v120_v53 = vrot.slane %v59_v39, %v87_v16  ;;  %v124_v56 = vrot.slane %v59_v39, %v91_v21 }
  0x36   :  { %v169_v51 = vsel %vm153_vm1, %v108_v44, 0.0  ;;  %v171_v54 = vsel %vm153_vm1, %v112_v47, 0.0  ;;  %v173_v57 = vsel %vm153_vm1, %v116_v50, 0.0  ;;  %v128_v59 = vrot.slane %v59_v39, %v95_v24 }
  0x37   :  { %v160_v40 = vadd.f32 %v159_v35, %v158_v36  ;;  %v175_v60 = vsel %vm153_vm1, %v120_v53, 0.0  ;;  %v132_v62 = vrot.slane %v59_v39, %v99_v25  ;;  %v177_v63 = vsel %vm153_vm1, %v124_v56, 0.0 }
  0x38   :  { %v136_v1 = vrot.slane %v59_v39, %v103_v34  ;;  %v179_v2 = vsel %vm153_vm1, %v128_v59, 0.0 }
  0x39   :  { %v162_v43 = vadd.f32 %v161_v38, %v160_v40  ;;  %v181_v4 = vsel %vm153_vm1, %v132_v62, 0.0 }
  0x3a   :  { %v183_v6 = vsel %vm153_vm1, %v136_v1, 0.0 }
  0x3b   :  { %v164_v46 = vadd.f32 %v163_v42, %v162_v43 }
  0x3d   :  { %v166_v49 = vadd.f32 %v165_v45, %v164_v46 }
  0x3f   :  { %v168_v52 = vadd.f32 %v167_v48, %v166_v49 }
  0x41   :  { %v170_v55 = vadd.f32 %v169_v51, %v168_v52 }
  0x43   :  { %v172_v58 = vadd.f32 %v171_v54, %v170_v55 }
  0x45   :  { %v174_v61 = vadd.f32 %v173_v57, %v172_v58 }
  0x47   :  { %v176_v0 = vadd.f32 %v175_v60, %v174_v61 }
  0x49   :  { %v178_v3 = vadd.f32 %v177_v63, %v176_v0 }
  0x4b   :  { %v180_v5 = vadd.f32 %v179_v2, %v178_v3 }
  0x4d   :  { %v182_v7 = vadd.f32 %v181_v4, %v180_v5 }
  0x4f   :  { %v184_v8 = vadd.f32 %v183_v6, %v182_v7 }
  0x51   :  { %185 = vadd.xlane.f32.xlu0 %v184_v8 }
  0xde   :  { %v186_v9 = vpop.xlane.xlu0 %185 }
  0xdf   :  { %v187_v10 = vrot.slane %v186_v9, 4 }
  0xe1   :  { %v188_v11 = vadd.f32 %v187_v10, %v186_v9 }
  0xe3   :  { %v189_v12 = vrot.slane %v188_v11, 2 }
  0xe5   :  { %v190_v13 = vadd.f32 %v189_v12, %v188_v11 }
  0xe7   :  { %v191_v14 = vrot.slane %v190_v13, 1 }
  0xe9   :  { %v192_v15 = vadd.f32 %v191_v14, %v190_v13 }
  0xeb   :  { %215 = vpush %v192_v15 }
 0x11c   :  { %s216_s5 = spop %215 }
 0x11d   :  { %v194_v16 = vstv %s216_s5 }
 0x11e   :  { %196 = vst.msk [vmem:[#allocation8] sm:$0x1] %vm195_vm3, %v194_v16 }
 0x11f   :  { %275 = shalt.err (!%p272_p6)
}
 0x120   :  { %s276_s10 = scalar_lea.hbm %s374_s2, 16 }
 0x121   :  { %p277_p7 = scmp.ne.s32.totalorder %s374_s2, %s276_s10  ;;  %p280_p8 = scmp.lt.u32.totalorder %s276_s10, %s374_s2 }
 0x123   :  { %p282_p9 = pnand %p280_p8, %p277_p7 }
 0x125   :  { %285 = shalt.err (!%p282_p9)
}
 0x126   :  { %206 = dma.vmem_to_hbm [thread:$0]  %s204_s4, 16, %s374_s2, [#allocation5]  }
 0x127   :  { %290 = dma.done.wait [#allocation5], 16  }
 0x128   :  { %291 = vsyncadd [#allocation5], 4294967280 }
 0x129   :  { %210 = vsyncpa [#allocation4], 1 }
 0x12a   :  { %211 = vsyncpa [#allocation7], 1 }
 0x12b   :  { %212 = vsyncpa [#allocation5], 1 }

</bundles_post_ra>
